<compile_context>
chip_gen: v6e
topology: v6e:2x2x1
jax: 0.10.0
libtpu: 0.0.40
codegen_flags: <defaults>
</compile_context>

<pallas_src>
import functools

import jax
import jax.numpy as jnp
from jax.experimental import pallas as pl
from jax.experimental.pallas import tpu as pltpu


NP = 128  # per-projection lane padding (one vreg of lanes)


def _rnn_seq_kernel(x_ref, h0_ref, w_ref, b_ref, out_ref, hid_ref, h_scr,
                    *, I, H, O):
    """One timestep of the fused RNN cell; hidden carried in VMEM scratch."""
    t = pl.program_id(0)

    @pl.when(t == 0)
    def _():
        h_scr[...] = h0_ref[...]                       # load initial hidden

    x = x_ref[...]                                     # [1, I]
    h = h_scr[...]                                     # [1, H]

    # Fused projection: concat([x, h]) @ W  ==  x @ W[:I] + h @ W[I:]
    wx = w_ref[pl.ds(0, I), :]                         # [I, 2*NP]
    wh = w_ref[pl.ds(I, H), :]                         # [H, 2*NP]
    fused = (jnp.dot(x, wx, preferred_element_type=jnp.float32)
             + jnp.dot(h, wh, preferred_element_type=jnp.float32)
             + b_ref[...])                             # [1, 2*NP]

    new_h = fused[:, :H]                               # [1, H]  (i2h result)
    logits = fused[:, NP:]                             # [1, NP], real lanes [0, O)

    # Numerically-stable softmax masked to the O real logits; exact divide.
    lane = jax.lax.broadcasted_iota(jnp.int32, (1, NP), 1)
    valid = lane < O
    masked = jnp.where(valid, logits, -jnp.inf)
    m = jnp.max(masked, axis=-1, keepdims=True)
    e = jnp.where(valid, jnp.exp(masked - m), 0.0)
    probs = e / jnp.sum(e, axis=-1, keepdims=True)     # exact normalization

    h_scr[...] = new_h                                 # carry to next step
    hid_ref[...] = new_h
    out_ref[...] = probs[:, :O]


def prepare_params(params):
    """One-time layout prep: transpose, fuse column-wise, f32-cast, pad lanes."""
    H, F = params["w_i2h"].shape
    O = params["w_i2o"].shape[0]
    I = F - H

    w = jnp.zeros((F, 2 * NP), jnp.float32)
    w = w.at[:, :H].set(params["w_i2h"].T.astype(jnp.float32))
    w = w.at[:, NP:NP + O].set(params["w_i2o"].T.astype(jnp.float32))

    b = jnp.zeros((1, 2 * NP), jnp.float32)
    b = b.at[0, :H].set(params["b_i2h"].astype(jnp.float32))
    b = b.at[0, NP:NP + O].set(params["b_i2o"].astype(jnp.float32))

    return {"w": w, "b": b,
            "input_size": int(I), "hidden_size": int(H), "output_size": int(O)}


@functools.partial(jax.jit,
                   static_argnames=("input_size", "hidden_size", "output_size"))
def rnn_forward_seq(xs, h0, w_fused, b_fused,
                    input_size, hidden_size, output_size):
    """Run the cell over T timesteps in ONE pallas_call.

    xs: [T, I] inputs; h0: [1, H] initial hidden.
    Returns (outputs [T, O] softmax probs, hiddens [T, H]).
    Equivalent to calling the PyTorch module's forward T times, carrying hidden.
    """
    xs = jnp.asarray(xs, jnp.float32)
    h0 = jnp.asarray(h0, jnp.float32)
    T = xs.shape[0]
    I, H, O = input_size, hidden_size, output_size
    xs3 = xs.reshape(T, 1, I)

    kernel = functools.partial(_rnn_seq_kernel, I=I, H=H, O=O)
    probs, hiddens = pl.pallas_call(
        kernel,
        grid=(T,),
        out_shape=(jax.ShapeDtypeStruct((T, 1, O), jnp.float32),
                   jax.ShapeDtypeStruct((T, 1, H), jnp.float32)),
        in_specs=[
            pl.BlockSpec((None, 1, I), lambda t: (t, 0, 0)),      # per-step x
            pl.BlockSpec((1, H), lambda t: (0, 0)),               # h0 (resident)
            pl.BlockSpec((I + H, 2 * NP), lambda t: (0, 0)),      # W  (resident)
            pl.BlockSpec((1, 2 * NP), lambda t: (0, 0)),          # b  (resident)
        ],
        out_specs=(
            pl.BlockSpec((None, 1, O), lambda t: (t, 0, 0)),      # per-step probs
            pl.BlockSpec((None, 1, H), lambda t: (t, 0, 0)),      # per-step hidden
        ),
        scratch_shapes=[pltpu.VMEM((1, H), jnp.float32)],          # hidden carry
        compiler_params=pltpu.CompilerParams(
            dimension_semantics=("arbitrary",)),                   # carried state
        cost_estimate=pl.CostEstimate(
            flops=2 * T * (I + H) * 2 * NP,
            transcendentals=T * NP,
            bytes_accessed=4 * (T * I + H + (I + H) * 2 * NP + 2 * NP
                                + T * (O + H)),
        ),
    )(xs3, h0, w_fused, b_fused)

    return probs.reshape(T, O), hiddens.reshape(T, H)


def rnn_forward(input_tensor, hidden_tensor, w_fused, b_fused,
                input_size, hidden_size, output_size):
    """Exact mirror of RNN.forward: returns (softmax output [1,O], hidden [1,H])."""
    x = jnp.asarray(input_tensor, jnp.float32).reshape(1, input_size)  # unsqueeze(0)
    probs, hiddens = rnn_forward_seq(x, hidden_tensor, w_fused, b_fused,
                                     input_size, hidden_size, output_size)
    return probs.reshape(1, output_size), hiddens.reshape(1, hidden_size)


def init_params(key, input_size, hidden_size, output_size):
    """Deterministic parameter init (shapes match nn.Linear in the module)."""
    F = input_size + hidden_size
    k1, k2, k3, k4 = jax.random.split(key, 4)
    bound = 1.0 / jnp.sqrt(jnp.float32(F))
    return {
        "w_i2h": jax.random.uniform(k1, (hidden_size, F), jnp.float32, -bound, bound),
        "b_i2h": jax.random.uniform(k2, (hidden_size,), jnp.float32, -bound, bound),
        "w_i2o": jax.random.uniform(k3, (output_size, F), jnp.float32, -bound, bound),
        "b_i2o": jax.random.uniform(k4, (output_size,), jnp.float32, -bound, bound),
    }


if __name__ == "__main__":
    input_size, hidden_size, output_size = 16, 32, 8
    seq_len = 8
    hp = jax.lax.Precision.HIGHEST  # exact f32 reference matmuls

    key = jax.random.PRNGKey(0)
    kp, kx = jax.random.split(key)
    params = init_params(kp, input_size, hidden_size, output_size)

    # One-time weight layout prep (hoisted out of the forward path).
    prep = prepare_params(params)
    prep["w"], prep["b"] = jax.block_until_ready((prep["w"], prep["b"]))

    xs = jax.random.normal(kx, (seq_len, input_size), jnp.float32)
    h0 = jnp.zeros((1, hidden_size), jnp.float32)  # init_hidden()

    # ---- single-step call (module forward semantics) ----
    out1, hid1 = rnn_forward(xs[0], h0, prep["w"], prep["b"],
                             input_size, hidden_size, output_size)
    out1, hid1 = jax.block_until_ready((out1, hid1))

    comb = jnp.concatenate([xs[0][None, :], h0], axis=1)
    hid_ref = jnp.dot(comb, params["w_i2h"].T, precision=hp) + params["b_i2h"]
    out_ref = jax.nn.softmax(
        jnp.dot(comb, params["w_i2o"].T, precision=hp) + params["b_i2o"], axis=1)
    assert out1.shape == (1, output_size) and hid1.shape == (1, hidden_size)
    assert jnp.allclose(hid1, hid_ref, atol=1e-3, rtol=1e-3), "hidden mismatch"
    assert jnp.allclose(out1, out_ref, atol=1e-3, rtol=1e-3), "output mismatch"
    assert jnp.allclose(jnp.sum(out1), 1.0, atol=1e-5), "softmax not normalized"

    # ---- full T-step sequence in ONE pallas_call ----
    outs, hids = rnn_forward_seq(xs, h0, prep["w"], prep["b"],
                                 input_size, hidden_size, output_size)
    outs, hids = jax.block_until_ready((outs, hids))
    assert outs.shape == (seq_len, output_size)
    assert hids.shape == (seq_len, hidden_size)

    h = h0
    for t in range(seq_len):
        comb = jnp.concatenate([xs[t][None, :], h], axis=1)
        h = jnp.dot(comb, params["w_i2h"].T, precision=hp) + params["b_i2h"]
        o = jax.nn.softmax(
            jnp.dot(comb, params["w_i2o"].T, precision=hp) + params["b_i2o"], axis=1)
        assert jnp.allclose(hids[t], h[0], atol=1e-3, rtol=1e-3), f"hidden mismatch @ {t}"
        assert jnp.allclose(outs[t], o[0], atol=1e-3, rtol=1e-3), f"output mismatch @ {t}"
    assert jnp.allclose(jnp.sum(outs, axis=-1), 1.0, atol=1e-5), "softmax not normalized"

    print("KERNEL_OK")
</pallas_src>

<mosaic_0001>
module attributes {stable_mosaic.version = 11 : i64} {
  func.func @_rnn_seq_kernel(%arg0: i32, %arg1: memref<1x1x16xf32, #tpu.memory_space<vmem>>, %arg2: memref<1x32xf32, #tpu.memory_space<vmem>>, %arg3: memref<48x256xf32, #tpu.memory_space<vmem>>, %arg4: memref<1x256xf32, #tpu.memory_space<vmem>>, %arg5: memref<1x1x8xf32, #tpu.memory_space<vmem>>, %arg6: memref<1x1x32xf32, #tpu.memory_space<vmem>>, %arg7: memref<1x32xf32, #tpu.memory_space<vmem>>) attributes {dimension_semantics = [#tpu.dimension_semantics<arbitrary>], iteration_bounds = array<i64: 1>, scalar_prefetch = 0 : i64, scratch_operands = 1 : i64, tpu.core_type = #tpu.core_type<tc>, window_params = [{transform_indices = @transform_0, window_bounds = array<i64: 1, 1, 16>}, {pipeline_mode = #tpu.pipeline_mode<synchronous>, transform_indices = @transform_1, window_bounds = array<i64: 1, 32>}, {pipeline_mode = #tpu.pipeline_mode<synchronous>, transform_indices = @transform_2, window_bounds = array<i64: 48, 256>}, {pipeline_mode = #tpu.pipeline_mode<synchronous>, transform_indices = @transform_3, window_bounds = array<i64: 1, 256>}, {transform_indices = @transform_4, window_bounds = array<i64: 1, 1, 8>}, {transform_indices = @transform_5, window_bounds = array<i64: 1, 1, 32>}]} {
    %c0_i32 = arith.constant 0 : i32
    %0 = arith.cmpi eq, %arg0, %c0_i32 : i32
    %1 = arith.extui %0 : i1 to i32
    %c0_i32_0 = arith.constant 0 : i32
    %2 = arith.cmpi ne, %1, %c0_i32_0 : i32
    scf.if %2 {
      %c0_23 = arith.constant 0 : index
      %c0_24 = arith.constant 0 : index
      %39 = vector.load %arg2[%c0_23, %c0_24] : memref<1x32xf32, #tpu.memory_space<vmem>>, vector<1x32xf32>
      %c0_25 = arith.constant 0 : index
      %c0_26 = arith.constant 0 : index
      %40 = vector.load %arg7[%c0_25, %c0_26] : memref<1x32xf32, #tpu.memory_space<vmem>>, vector<1x32xf32>
      tpu.vector_store %arg7[%c0_25, %c0_26], %39 {strides = array<i32>} : memref<1x32xf32, #tpu.memory_space<vmem>>, vector<1x32xf32>,
    } else {
    }
    %c0 = arith.constant 0 : index
    %c0_1 = arith.constant 0 : index
    %c0_2 = arith.constant 0 : index
    %3 = vector.load %arg1[%c0, %c0_1, %c0_2] : memref<1x1x16xf32, #tpu.memory_space<vmem>>, vector<1x1x16xf32>
    %4 = vector.shape_cast %3 : vector<1x1x16xf32> to vector<1x16xf32>
    %c0_3 = arith.constant 0 : index
    %c0_4 = arith.constant 0 : index
    %5 = vector.load %arg7[%c0_3, %c0_4] : memref<1x32xf32, #tpu.memory_space<vmem>>, vector<1x32xf32>
    %c0_5 = arith.constant 0 : index
    %c0_6 = arith.constant 0 : index
    %6 = vector.load %arg3[%c0_5, %c0_6] : memref<48x256xf32, #tpu.memory_space<vmem>>, vector<16x256xf32>
    %c16 = arith.constant 16 : index
    %c0_7 = arith.constant 0 : index
    %7 = vector.load %arg3[%c16, %c0_7] : memref<48x256xf32, #tpu.memory_space<vmem>>, vector<32x256xf32>
    %cst = arith.constant dense<0.000000e+00> : vector<1x256xf32>
    %8 = tpu.matmul %4, %6, %cst {dimension_numbers = #tpu.dot_dimension_numbers<[1], [0], [0], [1], [0, 0, 1, 1], [], []>} : vector<1x16xf32>, vector<16x256xf32>, vector<1x256xf32> -> vector<1x256xf32>
    %cst_8 = arith.constant dense<0.000000e+00> : vector<1x256xf32>
    %9 = tpu.matmul %5, %7, %cst_8 {dimension_numbers = #tpu.dot_dimension_numbers<[1], [0], [0], [1], [0, 0, 1, 1], [], []>} : vector<1x32xf32>, vector<32x256xf32>, vector<1x256xf32> -> vector<1x256xf32>
    %10 = arith.addf %8, %9 : vector<1x256xf32>
    %c0_9 = arith.constant 0 : index
    %c0_10 = arith.constant 0 : index
    %11 = vector.load %arg4[%c0_9, %c0_10] : memref<1x256xf32, #tpu.memory_space<vmem>>, vector<1x256xf32>
    %12 = arith.addf %10, %11 : vector<1x256xf32>
    %13 = vector.extract_strided_slice %12 {offsets = [0, 0], sizes = [1, 32], strides = [1, 1]} : vector<1x256xf32> to vector<1x32xf32>
    %14 = vector.extract_strided_slice %12 {offsets = [0, 128], sizes = [1, 128], strides = [1, 1]} : vector<1x256xf32> to vector<1x128xf32>
    %15 = tpu.iota {dimensions = array<i32: 1>} : vector<1x128xi32>
    %c8_i32 = arith.constant 8 : i32
    %16 = vector.broadcast %c8_i32 : i32 to vector<1x128xi32>
    %17 = arith.cmpi slt, %15, %16 : vector<1x128xi32>
    %cst_11 = arith.constant 0xFF800000 : f32
    %18 = vector.broadcast %cst_11 : f32 to vector<1x128xf32>
    %19 = arith.select %17, %14, %18 : vector<1x128xi1>, vector<1x128xf32>
    %cst_12 = arith.constant dense<0xFF800000> : vector<1xf32>
    %20 = vector.multi_reduction <maximumf>, %19, %cst_12 [1] : vector<1x128xf32> to vector<1xf32>
    %21 = vector.shape_cast %20 : vector<1xf32> to vector<1x1xf32>
    %22 = vector.broadcast %21 : vector<1x1xf32> to vector<1x128xf32>
    %23 = arith.subf %19, %22 : vector<1x128xf32>
    %24 = math.exp %23 : vector<1x128xf32>
    %cst_13 = arith.constant 0.000000e+00 : f32
    %25 = vector.broadcast %cst_13 : f32 to vector<1x128xf32>
    %26 = arith.select %17, %24, %25 : vector<1x128xi1>, vector<1x128xf32>
    %cst_14 = arith.constant dense<0.000000e+00> : vector<1xf32>
    %27 = vector.multi_reduction <add>, %26, %cst_14 [1] : vector<1x128xf32> to vector<1xf32>
    %28 = vector.shape_cast %27 : vector<1xf32> to vector<1x1xf32>
    %29 = vector.broadcast %28 : vector<1x1xf32> to vector<1x128xf32>
    %30 = arith.divf %26, %29 : vector<1x128xf32>
    %c0_15 = arith.constant 0 : index
    %c0_16 = arith.constant 0 : index
    %31 = vector.load %arg7[%c0_15, %c0_16] : memref<1x32xf32, #tpu.memory_space<vmem>>, vector<1x32xf32>
    tpu.vector_store %arg7[%c0_15, %c0_16], %13 {strides = array<i32>} : memref<1x32xf32, #tpu.memory_space<vmem>>, vector<1x32xf32>,
    %c0_17 = arith.constant 0 : index
    %c0_18 = arith.constant 0 : index
    %c0_19 = arith.constant 0 : index
    %32 = vector.load %arg6[%c0_17, %c0_18, %c0_19] : memref<1x1x32xf32, #tpu.memory_space<vmem>>, vector<1x1x32xf32>
    %33 = vector.shape_cast %32 : vector<1x1x32xf32> to vector<1x32xf32>
    %34 = vector.shape_cast %13 : vector<1x32xf32> to vector<1x1x32xf32>
    tpu.vector_store %arg6[%c0_17, %c0_18, %c0_19], %34 {strides = array<i32>} : memref<1x1x32xf32, #tpu.memory_space<vmem>>, vector<1x1x32xf32>,
    %35 = vector.extract_strided_slice %30 {offsets = [0, 0], sizes = [1, 8], strides = [1, 1]} : vector<1x128xf32> to vector<1x8xf32>
    %c0_20 = arith.constant 0 : index
    %c0_21 = arith.constant 0 : index
    %c0_22 = arith.constant 0 : index
    %36 = vector.load %arg5[%c0_20, %c0_21, %c0_22] : memref<1x1x8xf32, #tpu.memory_space<vmem>>, vector<1x1x8xf32>
    %37 = vector.shape_cast %36 : vector<1x1x8xf32> to vector<1x8xf32>
    %38 = vector.shape_cast %35 : vector<1x8xf32> to vector<1x1x8xf32>
    tpu.vector_store %arg5[%c0_20, %c0_21, %c0_22], %38 {strides = array<i32>} : memref<1x1x8xf32, #tpu.memory_space<vmem>>, vector<1x1x8xf32>,
    return
  }
  func.func @transform_0(%arg0: i32) -> (i32, i32, i32) {
    %c0_i32 = arith.constant 0 : i32
    %c0_i32_0 = arith.constant 0 : i32
    %c0_i32_1 = arith.constant 0 : i32
    return %arg0, %c0_i32, %c0_i32_0 : i32, i32, i32
  }
  func.func @transform_1(%arg0: i32) -> (i32, i32) {
    %c0_i32 = arith.constant 0 : i32
    %c0_i32_0 = arith.constant 0 : i32
    %c0_i32_1 = arith.constant 0 : i32
    return %c0_i32, %c0_i32_0 : i32, i32
  }
  func.func @transform_2(%arg0: i32) -> (i32, i32) {
    %c0_i32 = arith.constant 0 : i32
    %c0_i32_0 = arith.constant 0 : i32
    %c0_i32_1 = arith.constant 0 : i32
    return %c0_i32, %c0_i32_0 : i32, i32
  }
  func.func @transform_3(%arg0: i32) -> (i32, i32) {
    %c0_i32 = arith.constant 0 : i32
    %c0_i32_0 = arith.constant 0 : i32
    %c0_i32_1 = arith.constant 0 : i32
    return %c0_i32, %c0_i32_0 : i32, i32
  }
  func.func @transform_4(%arg0: i32) -> (i32, i32, i32) {
    %c0_i32 = arith.constant 0 : i32
    %c0_i32_0 = arith.constant 0 : i32
    %c0_i32_1 = arith.constant 0 : i32
    return %arg0, %c0_i32, %c0_i32_0 : i32, i32, i32
  }
  func.func @transform_5(%arg0: i32) -> (i32, i32, i32) {
    %c0_i32 = arith.constant 0 : i32
    %c0_i32_0 = arith.constant 0 : i32
    %c0_i32_1 = arith.constant 0 : i32
    return %arg0, %c0_i32, %c0_i32_0 : i32, i32, i32
  }
}

</mosaic_0001>

<bundles_post_ra>
// kernel: rnn_forward_seq.1
= control target key start
LH: loop header
LB: loop body
LE: loop exit
PB: predicated region body
PF: predicated region fallthrough
CT: control target
= control target key end

     0   :  { %11 = vsyncpa [#allocation4], 0  ;;  %s443_s0 = inlined_call_operand.vmem [shape: f32[1,1,16], index: 0, kind: input, shape index: {}]   ;;  %s444_s1 = inlined_call_operand.hbm [shape: f32[1,32], index: 1, kind: input, shape index: {}]   ;;  %s445_s2 = inlined_call_operand.hbm [shape: f32[48,256], index: 2, kind: input, shape index: {}]   ;;  %s446_s3 = inlined_call_operand.vmem [shape: f32[1,256], index: 3, kind: input, shape index: {}]   ;;  %s447_s4 = inlined_call_operand.hbm [shape: f32[1,1,8], index: 4, kind: output, shape index: {0}]   ;;  %s448_s5 = inlined_call_operand.hbm [shape: f32[1,1,32], index: 5, kind: output, shape index: {1}]  }
   0x1   :  { %12 = vsyncpa [#allocation7], 0 }
   0x2   :  { %13 = vsyncpa [#allocation5], 0 }
   0x3   :  { %14 = vsyncpa [#allocation10], 0  ;;  %s385_s18 = smov [#allocation3]   ;;  %s386_s20 = smov [#allocation6]  }
   0x4   :  { %s23_s19 = sshll.u32 %s385_s18, 4  ;;  %s32_s21 = sshll.u32 %s386_s20, 4  ;;  %s24_s19 = int_to_ptr.vmem [resolvable:$true] %s23_s19  ;;  %s33_s21 = int_to_ptr.vmem [resolvable:$true] %s32_s21 }
   0x5   :  { %s305_s22 = scalar_lea.vmem %s24_s19, 16  ;;  %s309_s23 = scalar_lea.vmem %s24_s19, 32 }
   0x6   :  { %p306_p0 = scmp.ne.s32.totalorder %s24_s19, %s305_s22  ;;  %p310_p1 = scmp.lt.s32.totalorder %s24_s19, %s24_s19 }
   0x7   :  { %p311_p2 = scmp.lt.s32.totalorder %s309_s23, %s305_s22 }
   0x9   :  { %p312_p3 = por %p311_p2, %p310_p1 }
   0xb   :  { %p313_p4 = pnand %p312_p3, %p306_p0 }
   0xd   :  { %316 = shalt.err (!%p313_p4)
}
   0xe   :  { %26 = dma.hbm_to_vmem [thread:$0]  %s444_s1, 16, %s24_s19, [#allocation4]  }
   0xf   :  { %s325_s26 = scalar_lea.vmem %s33_s21, 1536  ;;  %p330_p6 = scmp.lt.s32.totalorder %s33_s21, %s33_s21 }
  0x10   :  { %p326_p5 = scmp.ne.s32.totalorder %s33_s21, %s325_s26  ;;  %p331_p7 = scmp.lt.s32.totalorder %s325_s26, %s325_s26 }
  0x12   :  { %p332_p8 = por %p331_p7, %p330_p6 }
  0x14   :  { %p333_p9 = pnand %p332_p8, %p326_p5 }
  0x16   :  { %336 = shalt.err (!%p333_p9)
}
  0x17   :  { %s387_s27 = smov 256   ;;  %s388_s28 = smov 16  }
  0x18   :  { %38 = dma.hbm_to_vmem [thread:$0]  %s445_s2, 1536, %s33_s21, [#allocation7], %s387_s27, %s387_s27, %s388_s28  }
  0x19   :  { %377 = dma.done.wait [#allocation4], 16  }
  0x1a   :  { %378 = vsyncadd [#allocation4], 4294967280 }
  0x1b   :  { %379 = dma.done.wait [#allocation7], 1536  }
  0x1c   :  { %380 = vsyncadd [#allocation7], 4294965760  ;;  %v389_v0 = vmov 0.0   ;;  %v67_v1 = vld [vmem:[#allocation6 + $0x58] sm:$0xff]  ;;  %v66_v2 = vld [vmem:[#allocation6 + $0x50] sm:$0xff]  ;;  %vm52_vm0 = vcmask 253952   ;;  %v220_v16 = vlaneseq }
  0x1d   :  { %211 = vmatprep.mubr.f32.mxu1 %v389_v0  ;;  %136 = vmatprep.mubr.f32.mxu0 %v389_v0  ;;  %v65_v3 = vld [vmem:[#allocation6 + $0x48] sm:$0xff]  ;;  %v59_v4 = vld [vmem:[#allocation6 + $0x18] sm:$0xff]  ;;  %v64_v5 = vld [vmem:[#allocation6 + $0x40] sm:$0xff]  ;;  %vm143_vm1 = vcmask 130048   ;;  %vm68_vm2 = vcmask 261120   ;;  %vm236_vm4 = vcmask 1040384  }
  0x1e   :  { %96 = vmatprep.subr.mxu0 %v67_v1  ;;  %v58_v6 = vld [vmem:[#allocation6 + $0x10] sm:$0xff]  ;;  %175 = vmatprep.subr.mxu1 %v59_v4  ;;  %v63_v7 = vld [vmem:[#allocation6 + $0x38] sm:$0xff]  ;;  %v57_v8 = vld [vmem:[#allocation6 + $0x8] sm:$0xff]  ;;  %v221_v17 = vshrl.u32 %v220_v16, 7  ;;  %v233_v24 = vand.u32 127, %v220_v16 }
  0x1f   :  { %97 = vmatpush1.msra.mxu0 %v66_v2  ;;  %176 = vmatpush1.msra.mxu1 %v58_v6  ;;  %v62_v9 = vld [vmem:[#allocation6 + $0x30] sm:$0xff]  ;;  %v56_v10 = vld [vmem:[#allocation6] sm:$0xff]  ;;  %v54_v11 = vld [vmem:[%s443_s0] sm:$0x1] }
  0x20   :  { %98 = vmatprep.subr.mxu0 %v65_v3  ;;  %177 = vmatprep.subr.mxu1 %v57_v8  ;;  %v61_v12 = vld [vmem:[#allocation6 + $0x28] sm:$0xff]  ;;  %v51_v13 = vld [vmem:[#allocation3] sm:$0x1]  ;;  %v60_v14 = vld [vmem:[#allocation6 + $0x20] sm:$0xff]  ;;  %v222_v18 = vsub.s32 0, %v221_v17  ;;  %v226_v20 = vsub.s32 1, %v221_v17 }
  0x21   :  { %99 = vmatpush1.msra.mxu0 %v64_v5  ;;  %178 = vmatpush1.msra.mxu1 %v56_v10  ;;  %53 = vst.msk [vmem:[#allocation2] sm:$0x1] %vm52_vm0, %v51_v13  ;;  %v218_v19 = vld [vmem:[%s446_s3] sm:$0x3]  ;;  %vm234_vm3 = vcmp.lt.s32.totalorder %v233_v24, 8  ;;  %s390_s3 = smov [#allocation9]  }
  0x22   :  { %100 = vmatprep.subr.mxu0 %v63_v7  ;;  %285 = vmatmul.mubr.msk.f32.vlgmr.msra.gmra.mxu1 %vm143_vm1, %v54_v11  ;;  %v223_v22 = vrot.slane %v218_v19, %v222_v18  ;;  %v227_v26 = vrot.slane %v218_v19, %v226_v20  ;;  %s270_s7 = sshll.u32 %s390_s3, 4  ;;  %s271_s7 = int_to_ptr.vmem [resolvable:$true] %s270_s7 }
  0x23   :  { %101 = vmatpush1.msra.mxu0 %v62_v9  ;;  %s337_s8 = scalar_lea.vmem %s271_s7, 16  ;;  %s341_s9 = scalar_lea.vmem %s271_s7, 32 }
  0x24   :  { %102 = vmatprep.subr.mxu0 %v61_v12  ;;  %p338_p10 = scmp.ne.s32.totalorder %s271_s7, %s337_s8  ;;  %p342_p11 = scmp.lt.s32.totalorder %s271_s7, %s271_s7 }
  0x25   :  { %103 = vmatpush1.msra.mxu0 %v60_v14  ;;  %p343_p12 = scmp.lt.s32.totalorder %s341_s9, %s337_s8 }
  0x27   :  { %p344_p13 = por %p343_p12, %p342_p11 }
  0x28   :  { %v55_v15 = vld [vmem:[#allocation2] sm:$0x1] }
  0x29   :  { %284 = vmatmul.mubr.msk.f32.vlgmr.msra.gmra.mxu0 %vm68_vm2, %v55_v15  ;;  %p345_p0 = pnand %p344_p13, %p338_p10 }
  0xe2   :  { %v213_v21 = vpop.f32.mrf.mxu1 }
  0xe4   :  { %v215_v27 = vpop.f32.mrf.mxu1 }
  0xe9   :  { %v138_v23 = vpop.f32.mrf.mxu0 }
  0xea   :  { %v214_v25 = vadd.f32 %v213_v21, %v138_v23 }
  0xeb   :  { %v140_v28 = vpop.f32.mrf.mxu0 }
  0xec   :  { %v230_v29 = vadd.f32 %v223_v22, %v214_v25  ;;  %v216_v30 = vadd.f32 %v215_v27, %v140_v28 }
  0xee   :  { %250 = vst.msk [vmem:[#allocation2] sm:$0x1] %vm52_vm0, %v230_v29  ;;  %251 = vst.msk [vmem:[#allocation9] sm:$0x1] %vm52_vm0, %v230_v29  ;;  %v231_v31 = vadd.f32 %v227_v26, %v216_v30 }
  0xf0   :  { %v235_v32 = vsel %vm234_vm3, %v231_v31, -inf }
  0xf1   :  { %v237_v33 = vsel %vm236_vm4, %v235_v32, -inf }
  0xf2   :  { %238 = vmax.xlane.f32.xlu0 %v237_v33 }
 0x17b   :  { %v239_v34 = vpop.xlane.xlu0 %238 }
 0x17c   :  { %v240_v35 = vsub.f32 %v235_v32, %v239_v34 }
 0x17e   :  { %v241_v36 = vmul.f32 1.442695, %v240_v35 }
 0x180   :  { %293 = vpow2.f32 %v241_v36 }
 0x18d   :  { %v294_v37 = vpop.eup %293 }
 0x18e   :  { %v243_v38 = vsel %vm234_vm3, %v294_v37, 0.0 }
 0x18f   :  { %v244_v39 = vsel %vm236_vm4, %v243_v38, 0.0 }
 0x190   :  { %245 = vadd.xlane.f32.xlu0 %v244_v39 }
 0x191   :  { %348 = shalt.err (!%p345_p0)
}
 0x192   :  { %273 = dma.vmem_to_hbm [thread:$0]  %s271_s7, 16, %s448_s5, [#allocation10]   ;;  %vm252_vm5 = vcmask 57344  }
 0x193   :  { %s391_s12 = smov [#allocation8]  }
 0x194   :  { %s260_s13 = sshll.u32 %s391_s12, 4  ;;  %s261_s13 = int_to_ptr.vmem [resolvable:$true] %s260_s13 }
 0x195   :  { %s357_s14 = scalar_lea.vmem %s261_s13, 16  ;;  %s361_s15 = scalar_lea.vmem %s261_s13, 32 }
 0x196   :  { %p358_p1 = scmp.ne.s32.totalorder %s261_s13, %s357_s14  ;;  %p362_p2 = scmp.lt.s32.totalorder %s261_s13, %s261_s13 }
 0x197   :  { %p363_p3 = scmp.lt.s32.totalorder %s361_s15, %s357_s14 }
 0x199   :  { %p364_p4 = por %p363_p3, %p362_p2 }
 0x19b   :  { %p365_p5 = pnand %p364_p4, %p358_p1 }
 0x219   :  { %v246_v40 = vpop.xlane.xlu0 %245 }
 0x21a   :  { %295 = vrcp.f32 %v246_v40 }
 0x227   :  { %v296_v41 = vpop.eup %295 }
 0x228   :  { %v248_v42 = vmul.f32 %v296_v41, %v243_v38 }
 0x22a   :  { %253 = vst.msk [vmem:[#allocation8] sm:$0x1] %vm252_vm5, %v248_v42 }
 0x22b   :  { %368 = shalt.err (!%p365_p5)
}
 0x22c   :  { %263 = dma.vmem_to_hbm [thread:$0]  %s261_s13, 16, %s447_s4, [#allocation5]  }
 0x22d   :  { %381 = dma.done.wait [#allocation5], 16  }
 0x22e   :  { %382 = vsyncadd [#allocation5], 4294967280 }
 0x22f   :  { %383 = dma.done.wait [#allocation10], 16  }
 0x230   :  { %384 = vsyncadd [#allocation10], 4294967280 }
 0x231   :  { %280 = vsyncpa [#allocation4], 1 }
 0x232   :  { %281 = vsyncpa [#allocation7], 1 }
 0x233   :  { %282 = vsyncpa [#allocation5], 1 }
 0x234   :  { %283 = vsyncpa [#allocation10], 1 }

</bundles_post_ra>
